<compile_context>
chip_gen: v7x
topology: tpu7x:2x2x1
jax: 0.10.0
libtpu: 0.0.40
codegen_flags: <defaults>
</compile_context>

<pallas_src>
import functools
import math

import jax
import jax.numpy as jnp
from jax.experimental import pallas as pl
from jax.experimental.pallas import tpu as pltpu


def _round_up(x: int, m: int) -> int:
    return ((x + m - 1) // m) * m


# ----------------------------------------------------------------------------
# Kernels
# ----------------------------------------------------------------------------
def _eqlinear_kernel_multi_k(x_ref, w_ref, b_ref, o_ref, *, scale):
    """(M, N, K) grid. o_ref (f32, block index constant over k) is the
    accumulator itself — no separate VMEM scratch."""
    k = pl.program_id(2)

    @pl.when(k == 0)
    def _():
        o_ref[...] = jnp.zeros_like(o_ref)

    o_ref[...] += jnp.dot(
        x_ref[...], w_ref[...], preferred_element_type=jnp.float32
    )

    @pl.when(k == pl.num_programs(2) - 1)
    def _():
        # Equalized-lr scale + bias applied once per output tile (epilogue).
        o_ref[...] = o_ref[...] * scale + b_ref[...]


def _eqlinear_kernel_single_k(x_ref, w_ref, b_ref, o_ref, *, scale):
    """(M, N) grid fast path: whole contraction in one MXU call; no
    accumulator, no pl.when gating."""
    acc = jnp.dot(x_ref[...], w_ref[...], preferred_element_type=jnp.float32)
    o_ref[...] = (acc * scale + b_ref[...]).astype(o_ref.dtype)


# ----------------------------------------------------------------------------
# Wrappers
# ----------------------------------------------------------------------------
def prepare_equalized_weight(weight, *, allow_bf16: bool = False):
    """One-time param-layout step (do this at init, not per forward call):
    transpose [OUT, IN] -> [IN, OUT] so the MXU sees a natural [K, N] RHS,
    optionally pre-cast to bf16 for the bf16 MXU path."""
    w_t = jnp.transpose(weight)
    if allow_bf16:
        w_t = w_t.astype(jnp.bfloat16)
    return w_t


def equalized_linear(x, w_t, bias, *, allow_bf16: bool = False):
    """x: [B, IN], w_t: [IN, OUT] (pre-transposed), bias: [OUT] -> [B, OUT] f32."""
    B, IN = x.shape
    IN_w, OUT = w_t.shape
    assert IN == IN_w
    scale = 1.0 / math.sqrt(IN)  # static; baked into the kernel epilogue

    in_dtype = jnp.bfloat16 if allow_bf16 else jnp.float32
    if x.dtype != in_dtype:
        x = x.astype(in_dtype)
    if w_t.dtype != in_dtype:
        w_t = w_t.astype(in_dtype)
    bias = bias.astype(jnp.float32)

    # Sublane multiple for input tiles depends on dtype packing:
    # 8 rows/vreg for f32, 16 for bf16 (packed along sublanes).
    sublane = 16 if in_dtype == jnp.bfloat16 else 8

    # ---- tile-size selection -------------------------------------------
    # Max tiles 512x512x1024 f32: ~2x(2 MiB x) + 2x(2 MiB w) + 2x(1 MiB out)
    # ~= 10 MiB double-buffered (half that for bf16 inputs); the single-K fast
    # path tops out around ~18 MiB at IN_p=2048. Fits v7x (64 MiB physical)
    # and, with the raised vmem limit below, pipelines fully on v5e/v6e.
    TM = min(512, _round_up(B, sublane))
    B_p = _round_up(B, TM)

    OUT_128 = _round_up(OUT, 128)
    TN = min(512, OUT_128)
    # v7x: two TensorCores shard the "parallel" axes. If M collapsed to one
    # block, make sure N has >= 2 blocks (when OUT allows) so both cores work.
    if (B_p // TM) == 1 and OUT_128 >= 2 * 128:
        TN = min(TN, _round_up(OUT_128 // 2, 128))
    OUT_p = _round_up(OUT, TN)

    IN_128 = _round_up(IN, 128)
    FAST_PATH_MAX_K = 2048
    single_k = IN_128 <= FAST_PATH_MAX_K
    if single_k:
        TK = IN_128
        IN_p = IN_128
    else:
        TK = 1024
        IN_p = _round_up(IN, TK)

    # ---- pad only when actually needed (aligned shapes pay nothing) -----
    if B_p != B or IN_p != IN:
        x = jnp.pad(x, ((0, B_p - B), (0, IN_p - IN)))
    if IN_p != IN or OUT_p != OUT:
        w_t = jnp.pad(w_t, ((0, IN_p - IN), (0, OUT_p - OUT)))
    b2 = bias.reshape(1, OUT)
    if OUT_p != OUT:
        b2 = jnp.pad(b2, ((0, 0), (0, OUT_p - OUT)))

    itemsize = jnp.dtype(in_dtype).itemsize
    cost = pl.CostEstimate(
        flops=2 * B * IN * OUT,
        transcendentals=0,
        bytes_accessed=B * IN * itemsize + IN * OUT * itemsize
        + OUT * 4 + B * OUT * 4,
    )

    if single_k:
        grid = (B_p // TM, OUT_p // TN)
        kernel = functools.partial(_eqlinear_kernel_single_k, scale=scale)
        in_specs = [
            pl.BlockSpec((TM, TK), lambda i, j: (i, 0)),   # x tile
            pl.BlockSpec((TK, TN), lambda i, j: (0, j)),   # w^T tile
            pl.BlockSpec((1, TN), lambda i, j: (0, j)),    # bias tile
        ]
        out_specs = pl.BlockSpec((TM, TN), lambda i, j: (i, j))
        dims = ("parallel", "parallel")
    else:
        grid = (B_p // TM, OUT_p // TN, IN_p // TK)
        kernel = functools.partial(_eqlinear_kernel_multi_k, scale=scale)
        in_specs = [
            pl.BlockSpec((TM, TK), lambda i, j, k: (i, k)),  # x tile
            pl.BlockSpec((TK, TN), lambda i, j, k: (k, j)),  # w^T tile
            pl.BlockSpec((1, TN), lambda i, j, k: (0, j)),   # bias tile
        ]
        out_specs = pl.BlockSpec((TM, TN), lambda i, j, k: (i, j))
        dims = ("parallel", "parallel", "arbitrary")

    out_p = pl.pallas_call(
        kernel,
        out_shape=jax.ShapeDtypeStruct((B_p, OUT_p), jnp.float32),
        grid_spec=pltpu.PrefetchScalarGridSpec(
            num_scalar_prefetch=0,
            grid=grid,
            in_specs=in_specs,
            out_specs=out_specs,
        ),
        compiler_params=pltpu.CompilerParams(
            dimension_semantics=dims,
            # Raise the scoped VMEM limit (v5e default is only 16 MiB) but
            # stay under v7x's 64 MiB physical VMEM.
            vmem_limit_bytes=48 * 1024 * 1024,
        ),
        cost_estimate=cost,
    )(x, w_t, b2)

    if B_p != B or OUT_p != OUT:
        out_p = out_p[:B, :OUT]
    return out_p


if __name__ == "__main__":
    # Small config consistent with an EqualizedLinear forward.
    batch = 8
    in_features = 32
    out_features = 64
    bias_init = 0.0

    key = jax.random.PRNGKey(0)
    kx, kw = jax.random.split(key)

    # Deterministic parameter init mirroring __init__:
    #   weight ~ N(0, 1) of shape [out_features, in_features]
    #   bias   = ones(out_features) * bias_init
    weight = jax.random.normal(kw, (out_features, in_features), dtype=jnp.float32)
    bias = jnp.ones((out_features,), dtype=jnp.float32) * bias_init
    x = jax.random.normal(kx, (batch, in_features), dtype=jnp.float32)

    # Hoist the [OUT, IN] -> [IN, OUT] transpose to "parameter init" time.
    w_t = prepare_equalized_weight(weight)

    y = equalized_linear(x, w_t, bias)
    jax.block_until_ready(y)

    # Reference check against the plain-JAX equivalent of F.linear (f32 path).
    c = 1.0 / math.sqrt(in_features)
    y_ref = x @ (weight * c).T + bias
    assert y.shape == (batch, out_features)
    assert jnp.allclose(y, y_ref, atol=1e-5, rtol=1e-5)

    # bf16 MXU-feed path (f32 accumulation / f32 output) — looser tolerance.
    w_t_bf16 = prepare_equalized_weight(weight, allow_bf16=True)
    y_bf16 = equalized_linear(x, w_t_bf16, bias, allow_bf16=True)
    jax.block_until_ready(y_bf16)
    assert y_bf16.shape == (batch, out_features)
    assert jnp.allclose(y_bf16, y_ref, atol=1e-1, rtol=1e-1)

    print("KERNEL_OK")
</pallas_src>

<mosaic_0001>
module attributes {stable_mosaic.version = 11 : i64} {
  func.func @_eqlinear_kernel_single_k(%arg0: i32, %arg1: i32, %arg2: memref<8x128xf32, #tpu.memory_space<vmem>>, %arg3: memref<128x128xf32, #tpu.memory_space<vmem>>, %arg4: memref<1x128xf32, #tpu.memory_space<vmem>>, %arg5: memref<8x128xf32, #tpu.memory_space<vmem>>) attributes {dimension_semantics = [#tpu.dimension_semantics<parallel>, #tpu.dimension_semantics<parallel>], iteration_bounds = array<i64: 1, 1>, scalar_prefetch = 0 : i64, scratch_operands = 0 : i64, tpu.core_type = #tpu.core_type<tc>, window_params = [{transform_indices = @transform_0, window_bounds = array<i64: 8, 128>}, {transform_indices = @transform_1, window_bounds = array<i64: 128, 128>}, {transform_indices = @transform_2, window_bounds = array<i64: 1, 128>}, {transform_indices = @transform_3, window_bounds = array<i64: 8, 128>}]} {
    %c0 = arith.constant 0 : index
    %c0_0 = arith.constant 0 : index
    %0 = vector.load %arg2[%c0, %c0_0] : memref<8x128xf32, #tpu.memory_space<vmem>>, vector<8x128xf32>
    %c0_1 = arith.constant 0 : index
    %c0_2 = arith.constant 0 : index
    %1 = vector.load %arg3[%c0_1, %c0_2] : memref<128x128xf32, #tpu.memory_space<vmem>>, vector<128x128xf32>
    %cst = arith.constant dense<0.000000e+00> : vector<8x128xf32>
    %2 = tpu.matmul %0, %1, %cst {dimension_numbers = #tpu.dot_dimension_numbers<[1], [0], [0], [1], [0, 0, 1, 1], [], []>} : vector<8x128xf32>, vector<128x128xf32>, vector<8x128xf32> -> vector<8x128xf32>
    %cst_3 = arith.constant 0.176776692 : f32
    %3 = vector.broadcast %cst_3 : f32 to vector<8x128xf32>
    %4 = arith.mulf %2, %3 : vector<8x128xf32>
    %c0_4 = arith.constant 0 : index
    %c0_5 = arith.constant 0 : index
    %5 = vector.load %arg4[%c0_4, %c0_5] : memref<1x128xf32, #tpu.memory_space<vmem>>, vector<1x128xf32>
    %6 = vector.broadcast %5 : vector<1x128xf32> to vector<8x128xf32>
    %7 = arith.addf %4, %6 : vector<8x128xf32>
    %c0_6 = arith.constant 0 : index
    %c0_7 = arith.constant 0 : index
    %8 = vector.load %arg5[%c0_6, %c0_7] : memref<8x128xf32, #tpu.memory_space<vmem>>, vector<8x128xf32>
    tpu.vector_store %arg5[%c0_6, %c0_7], %7 {strides = array<i32>} : memref<8x128xf32, #tpu.memory_space<vmem>>, vector<8x128xf32>,
    return
  }
  func.func @transform_0(%arg0: i32, %arg1: i32) -> (i32, i32) {
    %c0_i32 = arith.constant 0 : i32
    %c0_i32_0 = arith.constant 0 : i32
    return %arg0, %c0_i32 : i32, i32
  }
  func.func @transform_1(%arg0: i32, %arg1: i32) -> (i32, i32) {
    %c0_i32 = arith.constant 0 : i32
    %c0_i32_0 = arith.constant 0 : i32
    return %c0_i32, %arg1 : i32, i32
  }
  func.func @transform_2(%arg0: i32, %arg1: i32) -> (i32, i32) {
    %c0_i32 = arith.constant 0 : i32
    %c0_i32_0 = arith.constant 0 : i32
    return %c0_i32, %arg1 : i32, i32
  }
  func.func @transform_3(%arg0: i32, %arg1: i32) -> (i32, i32) {
    %c0_i32 = arith.constant 0 : i32
    return %arg0, %arg1 : i32, i32
  }
}

</mosaic_0001>

<bundles_post_ra>
// kernel: tpu_custom_call.1
= control target key start
LH: loop header
LB: loop body
LE: loop exit
PB: predicated region body
PF: predicated region fallthrough
CT: control target
= control target key end

     0   :  { %8 = vsyncpa [#allocation3], 0  ;;  %s385_s0 = inlined_call_operand.hbm [shape: f32[8,128], index: 0, kind: input, shape index: {}]   ;;  %s386_s1 = inlined_call_operand.hbm [shape: f32[128,128], index: 1, kind: input, shape index: {}]   ;;  %s387_s2 = inlined_call_operand.vmem [shape: f32[1,128], index: 2, kind: input, shape index: {}]   ;;  %s388_s3 = inlined_call_operand.hbm [shape: f32[8,128], index: 3, kind: output, shape index: {}]  }
   0x1   :  { %9 = vsyncpa [#allocation6], 0 }
   0x2   :  { %10 = vsyncpa [#allocation4], 0  ;;  %s311_s12 = smov [#allocation2]   ;;  %s312_s14 = smov [#allocation5]  }
   0x3   :  { %s17_s13 = sshll.u32 %s311_s12, 4  ;;  %s26_s15 = sshll.u32 %s312_s14, 4  ;;  %s18_s13 = int_to_ptr.vmem [resolvable:$true] %s17_s13  ;;  %s339_s15 = int_to_ptr.vmem [resolvable:$true] %s26_s15 }
   0x4   :  { %s239_s18 = scalar_lea.hbm %s385_s0, 128 }
   0x5   :  { %p240_p0 = scmp.ne.s32.totalorder %s385_s0, %s239_s18  ;;  %p243_p1 = scmp.lt.u32.totalorder %s239_s18, %s385_s0 }
   0x7   :  { %p245_p2 = pnand %p243_p1, %p240_p0 }
   0x9   :  { %248 = shalt.err (!%p245_p2)
}
   0xa   :  { %s249_s23 = scalar_lea.vmem %s18_s13, 128  ;;  %p254_p4 = scmp.lt.s32.totalorder %s18_s13, %s18_s13 }
   0xb   :  { %p250_p3 = scmp.ne.s32.totalorder %s18_s13, %s249_s23  ;;  %p255_p5 = scmp.lt.s32.totalorder %s249_s23, %s249_s23 }
   0xd   :  { %p256_p6 = por %p255_p5, %p254_p4 }
   0xf   :  { %p257_p7 = pnand %p256_p6, %p250_p3 }
  0x11   :  { %260 = shalt.err (!%p257_p7)
}
  0x12   :  { %20 = dma.hbm_to_vmem [thread:$0]  %s385_s0, 128, %s18_s13, [#allocation3]  }
  0x13   :  { %s261_s28 = scalar_lea.hbm %s386_s1, 2048 }
  0x14   :  { %p262_p8 = scmp.ne.s32.totalorder %s386_s1, %s261_s28  ;;  %p265_p9 = scmp.lt.u32.totalorder %s261_s28, %s386_s1 }
  0x16   :  { %p267_p10 = pnand %p265_p9, %p262_p8 }
  0x18   :  { %270 = shalt.err (!%p267_p10)
}
  0x19   :  { %s271_s6 = scalar_lea.vmem %s339_s15, 2048  ;;  %p276_p12 = scmp.lt.s32.totalorder %s339_s15, %s339_s15 }
  0x1a   :  { %p272_p11 = scmp.ne.s32.totalorder %s339_s15, %s271_s6  ;;  %p277_p13 = scmp.lt.s32.totalorder %s271_s6, %s271_s6 }
  0x1c   :  { %p278_p0 = por %p277_p13, %p276_p12 }
  0x1e   :  { %p279_p1 = pnand %p278_p0, %p272_p11 }
  0x20   :  { %282 = shalt.err (!%p279_p1)
}
  0x21   :  { %s313_s0 = smov 128   ;;  %s314_s7 = smov 8  }
  0x22   :  { %32 = dma.hbm_to_vmem [thread:$0]  %s386_s1, 2048, %s339_s15, [#allocation6], %s313_s0, %s313_s0, %s314_s7  }
  0x23   :  { %305 = dma.done.wait [#allocation3], 128  }
  0x24   :  { %306 = vsyncadd [#allocation3], 4294967168 }
  0x25   :  { %307 = dma.done.wait [#allocation6], 2048  }
  0x26   :  { %308 = vsyncadd [#allocation6], 4294965248  ;;  %v315_v0 = vmov 0.0|0.0   ;;  %vm316_vm0 = vmmov 0   ;;  %v317_v1 = vmov 0.0   ;;  %v42_v2 = vld [vmem:[#allocation5] sm:$0xff] }
  0x27   :  { %207 = vmatprep.subr.bf16.mxu0 %v315_v0  ;;  %204 = vmatprep.mubr.msk.f32.mxu0 %vm316_vm0, %v317_v1  ;;  %v43_v3 = vld [vmem:[#allocation5 + $0x8] sm:$0xff]  ;;  %v44_v4 = vld [vmem:[#allocation5 + $0x10] sm:$0xff]  ;;  %v45_v6 = vld [vmem:[#allocation5 + $0x18] sm:$0xff]  ;;  %s318_s11 = smov [#allocation7]  }
  0x28   :  { %v208_v5 = vpack.c.bf16 %v43_v3, %v42_v2  ;;  %v211_v7 = vpack.c.bf16 %v45_v6, %v44_v4  ;;  %v46_v8 = vld [vmem:[#allocation5 + $0x20] sm:$0xff]  ;;  %v47_v9 = vld [vmem:[#allocation5 + $0x28] sm:$0xff]  ;;  %v48_v11 = vld [vmem:[#allocation5 + $0x30] sm:$0xff]  ;;  %s144_s12 = sshll.u32 %s318_s11, 4  ;;  %s145_s12 = int_to_ptr.vmem [resolvable:$true] %s144_s12 }
  0x29   :  { %v214_v10 = vpack.c.bf16 %v47_v9, %v46_v8  ;;  %v49_v12 = vld [vmem:[#allocation5 + $0x38] sm:$0xff]  ;;  %v50_v14 = vld [vmem:[#allocation5 + $0x40] sm:$0xff]  ;;  %v51_v15 = vld [vmem:[#allocation5 + $0x48] sm:$0xff]  ;;  %s283_s13 = scalar_lea.vmem %s145_s12, 128  ;;  %p288_p3 = scmp.lt.s32.totalorder %s145_s12, %s145_s12 }
  0x2a   :  { %209 = vmatpush3.bf16.msra.mxu0 %v208_v5  ;;  %v217_v13 = vpack.c.bf16 %v49_v12, %v48_v11  ;;  %v220_v16 = vpack.c.bf16 %v51_v15, %v50_v14  ;;  %v52_v17 = vld [vmem:[#allocation5 + $0x50] sm:$0xff]  ;;  %v53_v18 = vld [vmem:[#allocation5 + $0x58] sm:$0xff]  ;;  %v54_v20 = vld [vmem:[#allocation5 + $0x60] sm:$0xff]  ;;  %p284_p2 = scmp.ne.s32.totalorder %s145_s12, %s283_s13  ;;  %p289_p4 = scmp.lt.s32.totalorder %s283_s13, %s283_s13 }
  0x2b   :  { %210 = vmatprep.subr.bf16.mxu0 %v315_v0  ;;  %v223_v19 = vpack.c.bf16 %v53_v18, %v52_v17  ;;  %v55_v21 = vld [vmem:[#allocation5 + $0x68] sm:$0xff]  ;;  %v56_v23 = vld [vmem:[#allocation5 + $0x70] sm:$0xff]  ;;  %v57_v24 = vld [vmem:[#allocation5 + $0x78] sm:$0xff] }
  0x2c   :  { %v226_v22 = vpack.c.bf16 %v55_v21, %v54_v20  ;;  %v229_v25 = vpack.c.bf16 %v57_v24, %v56_v23  ;;  %v41_v26 = vld [vmem:[#allocation2] sm:$0xff]  ;;  %p290_p5 = por %p289_p4, %p288_p3 }
  0x2d   :  { %v154_v28 = vld [vmem:[%s387_s2] ss:$0 sm:$0xff] }
  0x2e   :  { %212 = vmatpush3.bf16.msra.mxu0 %v211_v7  ;;  %p291_p6 = pnand %p290_p5, %p284_p2 }
  0x2f   :  { %213 = vmatprep.subr.bf16.mxu0 %v315_v0 }
  0x32   :  { %215 = vmatpush3.bf16.msra.mxu0 %v214_v10 }
  0x33   :  { %216 = vmatprep.subr.bf16.mxu0 %v315_v0 }
  0x36   :  { %218 = vmatpush3.bf16.msra.mxu0 %v217_v13 }
  0x37   :  { %219 = vmatprep.subr.bf16.mxu0 %v315_v0 }
  0x3a   :  { %221 = vmatpush3.bf16.msra.mxu0 %v220_v16 }
  0x3b   :  { %222 = vmatprep.subr.bf16.mxu0 %v315_v0 }
  0x3e   :  { %224 = vmatpush3.bf16.msra.mxu0 %v223_v19 }
  0x3f   :  { %225 = vmatprep.subr.bf16.mxu0 %v315_v0 }
  0x42   :  { %227 = vmatpush3.bf16.msra.mxu0 %v226_v22 }
  0x43   :  { %228 = vmatprep.subr.bf16.mxu0 %v315_v0 }
  0x46   :  { %230 = vmatpush3.bf16.msra.mxu0 %v229_v25 }
  0x49   :  { %205 = vmatmul.mubr.f32.vlgmr.msra.gmra.mrb[0].mxu0 %v41_v26 }
 0x11c   :  { %v124_v27 = vpop.f32.mrb[0].mxu0 }
 0x11d   :  { %v128_v29 = vmul.f32 0.17677669, %v124_v27  ;;  %v206_v30 = vpop.f32.mrb[1].mxu0 }
 0x11f   :  { %v136_v31 = vadd.f32 %v154_v28, %v128_v29 }
 0x121   :  { %137 = vst [vmem:[#allocation7] sm:$0xff] %v136_v31 }
 0x122   :  { %294 = shalt.err (!%p291_p6)
}
 0x123   :  { %s295_s16 = scalar_lea.hbm %s388_s3, 128 }
 0x124   :  { %p296_p7 = scmp.ne.s32.totalorder %s388_s3, %s295_s16  ;;  %p299_p8 = scmp.lt.u32.totalorder %s295_s16, %s388_s3 }
 0x126   :  { %p301_p9 = pnand %p299_p8, %p296_p7 }
 0x128   :  { %304 = shalt.err (!%p301_p9)
}
 0x129   :  { %147 = dma.vmem_to_hbm [thread:$0]  %s145_s12, 128, %s388_s3, [#allocation4]  }
 0x12a   :  { %309 = dma.done.wait [#allocation4], 128  }
 0x12b   :  { %310 = vsyncadd [#allocation4], 4294967168 }
 0x12c   :  { %151 = vsyncpa [#allocation3], 1 }
 0x12d   :  { %152 = vsyncpa [#allocation6], 1 }
 0x12e   :  { %153 = vsyncpa [#allocation4], 1 }

</bundles_post_ra>
